<compile_context>
chip_gen: v7x
topology: tpu7x:2x2x1
jax: 0.10.0
libtpu: 0.0.40
codegen_flags: <defaults>
</compile_context>

<pallas_src>
import jax
import jax.numpy as jnp
from jax import lax
from jax.experimental import pallas as pl
from jax.experimental.pallas import tpu as pltpu


def _encoder_kernel(x_ref, *refs):
    """Fused MLP: 3x (Linear[+folded BN] -> ReLU) -> Linear[+folded BN] -> L2 norm.

    refs = [w1, b1, w2, b2, w3, b3, wp, bp, out_ref]
    W is (din, dout) in bf16 (or f32); b is (1, dout) f32 with BN folded in.
    """
    out_ref = refs[-1]
    param_refs = refs[:-1]
    n_layers = len(param_refs) // 2

    h = x_ref[...]                                          # single cast per matmul below
    for l in range(n_layers):
        w_ref, b_ref = param_refs[2 * l], param_refs[2 * l + 1]
        # MXU matmul: bf16 x bf16 -> f32 accumulation.
        y = jnp.dot(h.astype(w_ref.dtype), w_ref[...],
                    preferred_element_type=jnp.float32) + b_ref[...]
        if l < n_layers - 1:                                 # hidden layers only
            y = jnp.maximum(y, 0.0)                          # ReLU (Dropout = identity in eval)
        h = y

    # F.normalize(z, dim=1): z / max(||z||, 1e-12) == z * rsqrt(max(sumsq, 1e-24))
    sumsq = jnp.sum(h * h, axis=1, keepdims=True)
    out_ref[...] = (h * lax.rsqrt(jnp.maximum(sumsq, 1e-24))).astype(out_ref.dtype)


def _round_up(x, m):
    return ((x + m - 1) // m) * m


def _cost_estimate(B, x, folded_params, out_dtype):
    flops = 2 * B * sum(int(w.shape[0]) * int(w.shape[1]) for w, _ in folded_params)
    emb = int(folded_params[-1][0].shape[1])
    w_bytes = sum(int(w.size) * w.dtype.itemsize + int(b.size) * b.dtype.itemsize
                  for w, b in folded_params)
    act_bytes = B * (int(x.shape[1]) * x.dtype.itemsize + emb * jnp.dtype(out_dtype).itemsize)
    return pl.CostEstimate(flops=int(flops), transcendentals=int(B),
                           bytes_accessed=int(w_bytes + act_bytes))


def encoder_forward(x, folded_params, *, batch_tile=512, out_dtype=jnp.float32):
    """folded_params: list of (W'(din,dout) [bf16], b'(1,dout) [f32]) per layer.

    out_dtype=jnp.bfloat16 halves output HBM writeback (useful on v5e); f32
    default matches PyTorch semantics.
    """
    B, din = x.shape
    emb_dim = folded_params[-1][0].shape[1]
    flat = [p for layer in folded_params for p in layer]
    cost = _cost_estimate(B, x, folded_params, out_dtype)

    if B > 256:
        # Batch-tiled path: weights stay VMEM-resident (constant index_map),
        # batch is streamed/pipelined.  Tile is a multiple of 256 (full MXU on
        # v6e/v7x, >=2 of v5e's 128x128 MXUs) and chosen so grid >= 2, so the
        # "parallel" axis gives both v7x TensorCores work.  cdiv grid handles
        # ragged tails (rows are independent; Pallas masks the partial block).
        tile = max(8, min(batch_tile, _round_up(pl.cdiv(B, 2), 256)))
        grid = (pl.cdiv(B, tile),)

        def tiled_call(single_buffer_weights):
            in_specs = [pl.BlockSpec((tile, din), lambda i: (i, 0))]
            for p in flat:
                if single_buffer_weights:
                    # Weights never change across grid steps -> no need for
                    # the default double buffer.
                    spec = pl.BlockSpec(p.shape, lambda i: (0, 0),
                                        pipeline_mode=pl.Buffered(1))
                else:
                    spec = pl.BlockSpec(p.shape, lambda i: (0, 0))
                in_specs.append(spec)
            return pl.pallas_call(
                _encoder_kernel,
                out_shape=jax.ShapeDtypeStruct((B, emb_dim), out_dtype),
                grid=grid,
                in_specs=in_specs,
                out_specs=pl.BlockSpec((tile, emb_dim), lambda i: (i, 0)),
                compiler_params=pltpu.CompilerParams(
                    dimension_semantics=("parallel",)),
                cost_estimate=cost,
            )(x, *flat)

        try:
            return tiled_call(single_buffer_weights=True)
        except Exception:
            # Fallback if this JAX build rejects pl.Buffered(1) on the implicit
            # pipeline; double-buffered weights only cost ~0.4 MiB extra here.
            return tiled_call(single_buffer_weights=False)

    # Small-batch latency path: whole problem is a single VMEM tile (<1 MiB),
    # dominated by launch + DMA latency.  Explicit VMEM specs, no grid.
    vmem_spec = pl.BlockSpec(memory_space=pltpu.MemorySpace.VMEM)
    return pl.pallas_call(
        _encoder_kernel,
        out_shape=jax.ShapeDtypeStruct((B, emb_dim), out_dtype),
        in_specs=[vmem_spec] * (1 + len(flat)),
        out_specs=vmem_spec,
        cost_estimate=cost,
    )(x, *flat)


def init_params(key, input_dim, hidden_dims, embedding_dim):
    """Deterministic synthetic raw parameters (PyTorch-like Linear init + BN stats)."""
    dims = [input_dim] + list(hidden_dims) + [embedding_dim]
    raw = []
    for i in range(len(dims) - 1):
        din, dout = dims[i], dims[i + 1]
        key, kw, kb, kg, kbe, km, kv = jax.random.split(key, 7)
        bound = 1.0 / jnp.sqrt(jnp.float32(din))
        w = jax.random.uniform(kw, (din, dout), jnp.float32, -bound, bound)
        b = jax.random.uniform(kb, (1, dout), jnp.float32, -bound, bound)
        gamma = jax.random.uniform(kg, (1, dout), jnp.float32, 0.5, 1.5)
        beta = jax.random.normal(kbe, (1, dout), jnp.float32) * 0.1
        r_mean = jax.random.normal(km, (1, dout), jnp.float32) * 0.1
        r_var = jax.random.uniform(kv, (1, dout), jnp.float32, 0.5, 1.5)
        raw.append((w, b, gamma, beta, r_mean, r_var))
    return raw


def fold_params(raw_params, eps=1e-5, weight_dtype=jnp.bfloat16):
    """Fold BatchNorm1d (eval) + bias into each Linear; cast weights to bf16.

    # TODO(synk): on v7x, weight_dtype=fp8(e4m3) + per-column scale would halve
    # weight bytes again; kept bf16 for cross-generation accuracy/portability.
    """
    folded = []
    for (w, b, gamma, beta, r_mean, r_var) in raw_params:
        scale = gamma / jnp.sqrt(r_var + eps)          # (1, dout)
        shift = beta - r_mean * scale                  # (1, dout)
        w_f = (w * scale).astype(weight_dtype)         # W' = W * scale (per output col)
        b_f = (b * scale + shift).astype(jnp.float32)  # b' = b * scale + shift
        folded.append((w_f, b_f))
    return folded


def _reference(x, folded_params):
    """Pure-JAX reference of the same (folded, eval-mode) forward pass."""
    h = x
    n = len(folded_params)
    for l, (w, b) in enumerate(folded_params):
        y = jnp.dot(h.astype(w.dtype), w, preferred_element_type=jnp.float32) + b
        if l < n - 1:
            y = jnp.maximum(y, 0.0)
        h = y
    sumsq = jnp.sum(h * h, axis=1, keepdims=True)
    return h * lax.rsqrt(jnp.maximum(sumsq, 1e-24))


if __name__ == "__main__":
    input_dim = 64
    hidden_dims, embedding_dim = [512, 256, 128], 128

    key = jax.random.PRNGKey(0)
    kx, kx2, kx3, kp = jax.random.split(key, 4)
    raw = init_params(kp, input_dim, hidden_dims, embedding_dim)
    params = fold_params(raw)

    # 1) Small-batch latency path (single VMEM tile, no grid).
    B = 8
    x = jax.random.normal(kx, (B, input_dim), jnp.float32)
    z = encoder_forward(x, params)
    jax.block_until_ready(z)
    z_ref = _reference(x, params)
    assert z.shape == (B, embedding_dim)
    assert bool(jnp.allclose(z, z_ref, atol=1e-4, rtol=1e-4))
    assert bool(jnp.allclose(jnp.linalg.norm(z, axis=1), 1.0, atol=1e-3))

    # 2) Batch-tiled path, exact multiple: tile=256, grid=2 ("parallel" axis).
    B2 = 512
    x2 = jax.random.normal(kx2, (B2, input_dim), jnp.float32)
    z2 = encoder_forward(x2, params)
    jax.block_until_ready(z2)
    z2_ref = _reference(x2, params)
    assert z2.shape == (B2, embedding_dim)
    assert bool(jnp.allclose(z2, z2_ref, atol=1e-4, rtol=1e-4))

    # 3) Batch-tiled path with ragged tail via cdiv grid (B=640, tile=512, grid=2).
    B3 = 640
    x3 = jax.random.normal(kx3, (B3, input_dim), jnp.float32)
    z3 = encoder_forward(x3, params)
    jax.block_until_ready(z3)
    z3_ref = _reference(x3, params)
    assert z3.shape == (B3, embedding_dim)
    assert bool(jnp.allclose(z3, z3_ref, atol=1e-4, rtol=1e-4))

    print("KERNEL_OK")
</pallas_src>

<mosaic_0001>
module attributes {stable_mosaic.version = 11 : i64} {
  func.func @_encoder_kernel(%arg0: memref<8x64xf32, #tpu.memory_space<vmem>>, %arg1: memref<64x512xbf16, #tpu.memory_space<vmem>>, %arg2: memref<1x512xf32, #tpu.memory_space<vmem>>, %arg3: memref<512x256xbf16, #tpu.memory_space<vmem>>, %arg4: memref<1x256xf32, #tpu.memory_space<vmem>>, %arg5: memref<256x128xbf16, #tpu.memory_space<vmem>>, %arg6: memref<1x128xf32, #tpu.memory_space<vmem>>, %arg7: memref<128x128xbf16, #tpu.memory_space<vmem>>, %arg8: memref<1x128xf32, #tpu.memory_space<vmem>>, %arg9: memref<8x128xf32, #tpu.memory_space<vmem>>) attributes {dimension_semantics = [], scalar_prefetch = 0 : i64, scratch_operands = 0 : i64, tpu.core_type = #tpu.core_type<tc>} {
    %c0 = arith.constant 0 : index
    %c0_0 = arith.constant 0 : index
    %0 = vector.load %arg0[%c0, %c0_0] : memref<8x64xf32, #tpu.memory_space<vmem>>, vector<8x64xf32>
    %1 = arith.truncf %0 : vector<8x64xf32> to vector<8x64xbf16>
    %c0_1 = arith.constant 0 : index
    %c0_2 = arith.constant 0 : index
    %2 = vector.load %arg1[%c0_1, %c0_2] : memref<64x512xbf16, #tpu.memory_space<vmem>>, vector<64x512xbf16>
    %cst = arith.constant dense<0.000000e+00> : vector<8x512xf32>
    %3 = tpu.matmul %1, %2, %cst {dimension_numbers = #tpu.dot_dimension_numbers<[1], [0], [0], [1], [0, 0, 1, 1], [], []>} : vector<8x64xbf16>, vector<64x512xbf16>, vector<8x512xf32> -> vector<8x512xf32>
    %c0_3 = arith.constant 0 : index
    %c0_4 = arith.constant 0 : index
    %4 = vector.load %arg2[%c0_3, %c0_4] : memref<1x512xf32, #tpu.memory_space<vmem>>, vector<1x512xf32>
    %5 = vector.broadcast %4 : vector<1x512xf32> to vector<8x512xf32>
    %6 = arith.addf %3, %5 : vector<8x512xf32>
    %cst_5 = arith.constant 0.000000e+00 : f32
    %7 = vector.broadcast %cst_5 : f32 to vector<8x512xf32>
    %8 = arith.maximumf %6, %7 : vector<8x512xf32>
    %9 = arith.truncf %8 : vector<8x512xf32> to vector<8x512xbf16>
    %c0_6 = arith.constant 0 : index
    %c0_7 = arith.constant 0 : index
    %10 = vector.load %arg3[%c0_6, %c0_7] : memref<512x256xbf16, #tpu.memory_space<vmem>>, vector<512x256xbf16>
    %cst_8 = arith.constant dense<0.000000e+00> : vector<8x256xf32>
    %11 = tpu.matmul %9, %10, %cst_8 {dimension_numbers = #tpu.dot_dimension_numbers<[1], [0], [0], [1], [0, 0, 1, 1], [], []>} : vector<8x512xbf16>, vector<512x256xbf16>, vector<8x256xf32> -> vector<8x256xf32>
    %c0_9 = arith.constant 0 : index
    %c0_10 = arith.constant 0 : index
    %12 = vector.load %arg4[%c0_9, %c0_10] : memref<1x256xf32, #tpu.memory_space<vmem>>, vector<1x256xf32>
    %13 = vector.broadcast %12 : vector<1x256xf32> to vector<8x256xf32>
    %14 = arith.addf %11, %13 : vector<8x256xf32>
    %cst_11 = arith.constant 0.000000e+00 : f32
    %15 = vector.broadcast %cst_11 : f32 to vector<8x256xf32>
    %16 = arith.maximumf %14, %15 : vector<8x256xf32>
    %17 = arith.truncf %16 : vector<8x256xf32> to vector<8x256xbf16>
    %c0_12 = arith.constant 0 : index
    %c0_13 = arith.constant 0 : index
    %18 = vector.load %arg5[%c0_12, %c0_13] : memref<256x128xbf16, #tpu.memory_space<vmem>>, vector<256x128xbf16>
    %cst_14 = arith.constant dense<0.000000e+00> : vector<8x128xf32>
    %19 = tpu.matmul %17, %18, %cst_14 {dimension_numbers = #tpu.dot_dimension_numbers<[1], [0], [0], [1], [0, 0, 1, 1], [], []>} : vector<8x256xbf16>, vector<256x128xbf16>, vector<8x128xf32> -> vector<8x128xf32>
    %c0_15 = arith.constant 0 : index
    %c0_16 = arith.constant 0 : index
    %20 = vector.load %arg6[%c0_15, %c0_16] : memref<1x128xf32, #tpu.memory_space<vmem>>, vector<1x128xf32>
    %21 = vector.broadcast %20 : vector<1x128xf32> to vector<8x128xf32>
    %22 = arith.addf %19, %21 : vector<8x128xf32>
    %cst_17 = arith.constant 0.000000e+00 : f32
    %23 = vector.broadcast %cst_17 : f32 to vector<8x128xf32>
    %24 = arith.maximumf %22, %23 : vector<8x128xf32>
    %25 = arith.truncf %24 : vector<8x128xf32> to vector<8x128xbf16>
    %c0_18 = arith.constant 0 : index
    %c0_19 = arith.constant 0 : index
    %26 = vector.load %arg7[%c0_18, %c0_19] : memref<128x128xbf16, #tpu.memory_space<vmem>>, vector<128x128xbf16>
    %cst_20 = arith.constant dense<0.000000e+00> : vector<8x128xf32>
    %27 = tpu.matmul %25, %26, %cst_20 {dimension_numbers = #tpu.dot_dimension_numbers<[1], [0], [0], [1], [0, 0, 1, 1], [], []>} : vector<8x128xbf16>, vector<128x128xbf16>, vector<8x128xf32> -> vector<8x128xf32>
    %c0_21 = arith.constant 0 : index
    %c0_22 = arith.constant 0 : index
    %28 = vector.load %arg8[%c0_21, %c0_22] : memref<1x128xf32, #tpu.memory_space<vmem>>, vector<1x128xf32>
    %29 = vector.broadcast %28 : vector<1x128xf32> to vector<8x128xf32>
    %30 = arith.addf %27, %29 : vector<8x128xf32>
    %31 = arith.mulf %30, %30 : vector<8x128xf32>
    %cst_23 = arith.constant dense<0.000000e+00> : vector<8xf32>
    %32 = vector.multi_reduction <add>, %31, %cst_23 [1] : vector<8x128xf32> to vector<8xf32>
    %33 = vector.shape_cast %32 : vector<8xf32> to vector<8x1xf32>
    %cst_24 = arith.constant 1.000000e-24 : f32
    %34 = vector.broadcast %cst_24 : f32 to vector<8x1xf32>
    %35 = arith.maximumf %33, %34 : vector<8x1xf32>
    %36 = math.rsqrt %35 : vector<8x1xf32>
    %37 = vector.broadcast %36 : vector<8x1xf32> to vector<8x128xf32>
    %38 = arith.mulf %30, %37 : vector<8x128xf32>
    %c0_25 = arith.constant 0 : index
    %c0_26 = arith.constant 0 : index
    %39 = vector.load %arg9[%c0_25, %c0_26] : memref<8x128xf32, #tpu.memory_space<vmem>>, vector<8x128xf32>
    tpu.vector_store %arg9[%c0_25, %c0_26], %38 {strides = array<i32>} : memref<8x128xf32, #tpu.memory_space<vmem>>, vector<8x128xf32>,
    return
  }
}

</mosaic_0001>

<bundles_post_ra>
// kernel: tpu_custom_call.1
= control target key start
LH: loop header
LB: loop body
LE: loop exit
PB: predicated region body
PF: predicated region fallthrough
CT: control target
= control target key end

     0   :  { %14 = vsyncpa [#allocation3], 0  ;;  %s1758_s0 = inlined_call_operand.hbm [shape: f32[8,64], index: 0, kind: input, shape index: {}]   ;;  %s1759_s1 = inlined_call_operand.hbm [shape: bf16[64,512], index: 1, kind: input, shape index: {}]   ;;  %s1760_s2 = inlined_call_operand.vmem [shape: f32[1,512], index: 2, kind: input, shape index: {}]   ;;  %s1761_s3 = inlined_call_operand.hbm [shape: bf16[512,256], index: 3, kind: input, shape index: {}]   ;;  %s1762_s4 = inlined_call_operand.vmem [shape: f32[1,256], index: 4, kind: input, shape index: {}]   ;;  %s1763_s5 = inlined_call_operand.hbm [shape: bf16[256,128], index: 5, kind: input, shape index: {}]   ;;  %s1764_s6 = inlined_call_operand.vmem [shape: f32[1,128], index: 6, kind: input, shape index: {}]   ;;  %s1765_s7 = inlined_call_operand.hbm [shape: bf16[128,128], index: 7, kind: input, shape index: {}]   ;;  %s1766_s8 = inlined_call_operand.vmem [shape: f32[1,128], index: 8, kind: input, shape index: {}]   ;;  %s1767_s9 = inlined_call_operand.hbm [shape: f32[8,128], index: 9, kind: output, shape index: {}]  }
   0x1   :  { %15 = vsyncpa [#allocation6], 0 }
   0x2   :  { %16 = vsyncpa [#allocation9], 0 }
   0x3   :  { %17 = vsyncpa [#allocation4], 0  ;;  %s1574_s30 = smov [#allocation5]   ;;  %s1434_s13 = scalar_lea.hbm %s1759_s1, 2048 }
   0x4   :  { %s33_s10 = sshll.u32 %s1574_s30, 4  ;;  %p1435_p0 = scmp.ne.s32.totalorder %s1759_s1, %s1434_s13  ;;  %s34_s10 = int_to_ptr.vmem [resolvable:$true] %s33_s10 }
   0x5   :  { %p1438_p1 = scmp.lt.u32.totalorder %s1434_s13, %s1759_s1 }
   0x7   :  { %p1440_p2 = pnand %p1438_p1, %p1435_p0 }
   0x9   :  { %1443 = shalt.err (!%p1440_p2)
}
   0xa   :  { %s1444_s18 = scalar_lea.vmem %s34_s10, 2048  ;;  %p1449_p4 = scmp.lt.s32.totalorder %s34_s10, %s34_s10 }
   0xb   :  { %p1445_p3 = scmp.ne.s32.totalorder %s34_s10, %s1444_s18  ;;  %p1450_p5 = scmp.lt.s32.totalorder %s1444_s18, %s1444_s18 }
   0xd   :  { %p1451_p6 = por %p1450_p5, %p1449_p4 }
   0xf   :  { %p1452_p7 = pnand %p1451_p6, %p1445_p3 }
  0x11   :  { %1455 = shalt.err (!%p1452_p7)
}
  0x12   :  { %s1575_s19 = smov 256   ;;  %s1576_s20 = smov 16  }
  0x13   :  { %39 = dma.hbm_to_vmem [thread:$0]  %s1759_s1, 2048, %s34_s10, [#allocation6], %s1575_s19, %s1575_s19, %s1576_s20  }
  0x14   :  { %s1577_s23 = smov [#allocation8]   ;;  %s1456_s27 = scalar_lea.hbm %s1763_s5, 2048 }
  0x15   :  { %s61_s24 = sshll.u32 %s1577_s23, 4  ;;  %p1457_p8 = scmp.ne.s32.totalorder %s1763_s5, %s1456_s27  ;;  %s62_s24 = int_to_ptr.vmem [resolvable:$true] %s61_s24 }
  0x16   :  { %p1460_p9 = scmp.lt.u32.totalorder %s1456_s27, %s1763_s5 }
  0x18   :  { %p1462_p10 = pnand %p1460_p9, %p1457_p8 }
  0x1a   :  { %1465 = shalt.err (!%p1462_p10)
}
  0x1b   :  { %s1466_s12 = scalar_lea.vmem %s62_s24, 2048  ;;  %p1471_p12 = scmp.lt.s32.totalorder %s62_s24, %s62_s24 }
  0x1c   :  { %p1467_p11 = scmp.ne.s32.totalorder %s62_s24, %s1466_s12  ;;  %p1472_p13 = scmp.lt.s32.totalorder %s1466_s12, %s1466_s12 }
  0x1e   :  { %p1473_p0 = por %p1472_p13, %p1471_p12 }
  0x20   :  { %p1474_p1 = pnand %p1473_p0, %p1467_p11 }
  0x22   :  { %1477 = shalt.err (!%p1474_p1)
}
  0x23   :  { %s1578_s1 = smov 64   ;;  %s1579_s10 = smov 4  }
  0x24   :  { %67 = dma.hbm_to_vmem [thread:$0]  %s1763_s5, 2048, %s62_s24, [#allocation9], %s1578_s1, %s1578_s1, %s1579_s10  }
  0x25   :  { %s1580_s15 = smov [#allocation2]   ;;  %s1581_s17 = smov [#allocation7]  }
  0x26   :  { %s24_s16 = sshll.u32 %s1580_s15, 4  ;;  %s47_s18 = sshll.u32 %s1581_s17, 4  ;;  %s25_s16 = int_to_ptr.vmem [resolvable:$true] %s24_s16  ;;  %s1666_s18 = int_to_ptr.vmem [resolvable:$true] %s47_s18 }
  0x27   :  { %s1478_s21 = scalar_lea.hbm %s1758_s0, 128 }
  0x28   :  { %p1479_p2 = scmp.ne.s32.totalorder %s1758_s0, %s1478_s21  ;;  %p1482_p3 = scmp.lt.u32.totalorder %s1478_s21, %s1758_s0 }
  0x2a   :  { %p1484_p4 = pnand %p1482_p3, %p1479_p2 }
  0x2c   :  { %1487 = shalt.err (!%p1484_p4)
}
  0x2d   :  { %s1488_s5 = scalar_lea.vmem %s25_s16, 128  ;;  %p1493_p6 = scmp.lt.s32.totalorder %s25_s16, %s25_s16 }
  0x2e   :  { %p1489_p5 = scmp.ne.s32.totalorder %s25_s16, %s1488_s5  ;;  %p1494_p7 = scmp.lt.s32.totalorder %s1488_s5, %s1488_s5 }
  0x30   :  { %p1495_p8 = por %p1494_p7, %p1493_p6 }
  0x32   :  { %p1496_p9 = pnand %p1495_p8, %p1489_p5 }
  0x34   :  { %1499 = shalt.err (!%p1496_p9)
}
  0x35   :  { %27 = dma.hbm_to_vmem [thread:$0]  %s1758_s0, 128, %s25_s16, [#allocation3]  }
  0x36   :  { %s1500_s30 = scalar_lea.hbm %s1761_s3, 8192 }
  0x37   :  { %p1501_p10 = scmp.ne.s32.totalorder %s1761_s3, %s1500_s30  ;;  %p1504_p11 = scmp.lt.u32.totalorder %s1500_s30, %s1761_s3 }
  0x39   :  { %p1506_p12 = pnand %p1504_p11, %p1501_p10 }
  0x3b   :  { %1509 = shalt.err (!%p1506_p12)
}
  0x3c   :  { %s1510_s15 = scalar_lea.vmem %s1666_s18, 8192  ;;  %p1515_p0 = scmp.lt.s32.totalorder %s1666_s18, %s1666_s18 }
  0x3d   :  { %p1511_p13 = scmp.ne.s32.totalorder %s1666_s18, %s1510_s15  ;;  %p1516_p1 = scmp.lt.s32.totalorder %s1510_s15, %s1510_s15 }
  0x3f   :  { %p1517_p2 = por %p1516_p1, %p1515_p0 }
  0x41   :  { %p1518_p3 = pnand %p1517_p2, %p1511_p13 }
  0x43   :  { %1521 = shalt.err (!%p1518_p3)
}
  0x44   :  { %s1582_s0 = smov 128   ;;  %s1583_s16 = smov 8  }
  0x45   :  { %53 = dma.hbm_to_vmem [thread:$0]  %s1761_s3, 8192, %s1666_s18, [#allocation6], %s1582_s0, %s1582_s0, %s1583_s16  }
  0x46   :  { %s1584_s20 = smov [#allocation10]   ;;  %s1522_s25 = scalar_lea.hbm %s1765_s7, 1024 }
  0x47   :  { %s75_s21 = sshll.u32 %s1584_s20, 4  ;;  %p1523_p4 = scmp.ne.s32.totalorder %s1765_s7, %s1522_s25  ;;  %s76_s21 = int_to_ptr.vmem [resolvable:$true] %s75_s21 }
  0x48   :  { %p1526_p5 = scmp.lt.u32.totalorder %s1522_s25, %s1765_s7 }
  0x4a   :  { %p1528_p6 = pnand %p1526_p5, %p1523_p4 }
  0x4c   :  { %1531 = shalt.err (!%p1528_p6)
}
  0x4d   :  { %s1532_s28 = scalar_lea.vmem %s76_s21, 1024  ;;  %p1537_p8 = scmp.lt.s32.totalorder %s76_s21, %s76_s21 }
  0x4e   :  { %p1533_p7 = scmp.ne.s32.totalorder %s76_s21, %s1532_s28  ;;  %p1538_p9 = scmp.lt.s32.totalorder %s1532_s28, %s1532_s28 }
  0x50   :  { %p1539_p10 = por %p1538_p9, %p1537_p8 }
  0x52   :  { %p1540_p11 = pnand %p1539_p10, %p1533_p7 }
  0x54   :  { %1543 = shalt.err (!%p1540_p11)
}
  0x55   :  { %81 = dma.hbm_to_vmem [thread:$0]  %s1765_s7, 1024, %s76_s21, [#allocation9], %s1578_s1, %s1578_s1, %s1579_s10  }
  0x56   :  { %1566 = dma.done.wait [#allocation3], 128  }
  0x57   :  { %1567 = vsyncadd [#allocation3], 4294967168 }
  0x58   :  { %1568 = dma.done.wait [#allocation6], 10240  }
  0x59   :  { %1569 = vsyncadd [#allocation6], 4294957056 }
  0x5a   :  { %1570 = dma.done.wait [#allocation9], 3072  }
  0x5b   :  { %1571 = vsyncadd [#allocation9], 4294964224  ;;  %v1585_v0 = vmov 0   ;;  %v1288_v1 = vld [vmem:[#allocation5 + $0x4] ss:$16 sps:$4 sm:$0xff]   ;;  %v100_v9 = vld [vmem:[#allocation2] sm:$0xff] }
  0x5c   :  { %256 = vmatprep.mubr.bf16.mxu1 %v1585_v0  ;;  %v1290_v2 = vld [vmem:[#allocation5] ss:$16 sps:$4 sm:$0xff]   ;;  %224 = vmatprep.subr.bf16.mxu1 %v1288_v1  ;;  %v1291_v3 = vld [vmem:[#allocation5 + $0x24] ss:$16 sps:$4 sm:$0xff]   ;;  %v1302_v10 = vld [vmem:[#allocation5 + $0xc] ss:$16 sps:$4 sm:$0xff]   ;;  %v101_v14 = vpack.c.bf16 %v100_v9, %v100_v9 }
  0x5d   :  { %225 = vmatpush1.bf16.msra.mxu1 %v1290_v2  ;;  %v1293_v4 = vld [vmem:[#allocation5 + $0x20] ss:$16 sps:$4 sm:$0xff]   ;;  %v1294_v5 = vld [vmem:[#allocation5 + $0x44] ss:$16 sps:$4 sm:$0xff]   ;;  %v1300_v15 = vld [vmem:[#allocation5 + $0x8] ss:$16 sps:$4 sm:$0xff]  }
  0x5e   :  { %226 = vmatprep.subr.bf16.mxu1 %v1291_v3  ;;  %v1296_v6 = vld [vmem:[#allocation5 + $0x40] ss:$16 sps:$4 sm:$0xff]   ;;  %v1297_v7 = vld [vmem:[#allocation5 + $0x64] ss:$16 sps:$4 sm:$0xff]   ;;  %vm220_vm0 = vcmask 523264   ;;  %v1410_v54 = vld [vmem:[#allocation8 + $0x48] sm:$0xff]  }
  0x5f   :  { %v1299_v8 = vld [vmem:[#allocation5 + $0x60] ss:$16 sps:$4 sm:$0xff]   ;;  %v1312_v11 = vld [vmem:[#allocation7 + $0x4] ss:$8 sps:$4 sm:$0xff]   ;;  %v1315_v13 = vld [vmem:[#allocation7 + $0x14] ss:$8 sps:$4 sm:$0xff]  }
  0x60   :  { %v1314_v12 = vld [vmem:[#allocation7] ss:$8 sps:$4 sm:$0xff]   ;;  %710 = vmatprep.subr.bf16.mxu0 %v1312_v11  ;;  %v1317_v16 = vld [vmem:[#allocation7 + $0x10] ss:$8 sps:$4 sm:$0xff]   ;;  %v1305_v17 = vld [vmem:[#allocation5 + $0x2c] ss:$16 sps:$4 sm:$0xff]  }
  0x61   :  { %227 = vmatpush1.bf16.msra.mxu1 %v1293_v4  ;;  %711 = vmatpush1.bf16.msra.mxu0 %v1314_v12  ;;  %v1318_v18 = vld [vmem:[#allocation7 + $0x24] ss:$8 sps:$4 sm:$0xff]   ;;  %v1303_v19 = vld [vmem:[#allocation5 + $0x28] ss:$16 sps:$4 sm:$0xff]   ;;  %v1321_v21 = vld [vmem:[#allocation7 + $0x34] ss:$8 sps:$4 sm:$0xff]  }
  0x62   :  { %228 = vmatprep.subr.bf16.mxu1 %v1294_v5  ;;  %712 = vmatprep.subr.bf16.mxu0 %v1315_v13  ;;  %v1320_v20 = vld [vmem:[#allocation7 + $0x20] ss:$8 sps:$4 sm:$0xff]   ;;  %v1308_v22 = vld [vmem:[#allocation5 + $0x4c] ss:$16 sps:$4 sm:$0xff]   ;;  %v1323_v24 = vld [vmem:[#allocation7 + $0x30] ss:$8 sps:$4 sm:$0xff]  }
  0x63   :  { %v1306_v23 = vld [vmem:[#allocation5 + $0x48] ss:$16 sps:$4 sm:$0xff]   ;;  %v1324_v25 = vld [vmem:[#allocation7 + $0x44] ss:$8 sps:$4 sm:$0xff]   ;;  %v1327_v29 = vld [vmem:[#allocation7 + $0x54] ss:$8 sps:$4 sm:$0xff]  }
  0x64   :  { %v1311_v26 = vld [vmem:[#allocation5 + $0x6c] ss:$16 sps:$4 sm:$0xff]   ;;  %v1309_v27 = vld [vmem:[#allocation5 + $0x68] ss:$16 sps:$4 sm:$0xff]   ;;  %v1408_v52 = vld [vmem:[#allocation8 + $0x40] sm:$0xff]   ;;  %vm1587_vm1 = vmmov 0  }
  0x65   :  { %229 = vmatpush1.bf16.msra.mxu1 %v1296_v6  ;;  %713 = vmatpush1.bf16.msra.mxu0 %v1317_v16  ;;  %v1326_v28 = vld [vmem:[#allocation7 + $0x40] ss:$8 sps:$4 sm:$0xff]   ;;  %v1329_v30 = vld [vmem:[#allocation7 + $0x50] ss:$8 sps:$4 sm:$0xff]   ;;  %v1330_v31 = vld [vmem:[#allocation7 + $0x64] ss:$8 sps:$4 sm:$0xff]  }
  0x66   :  { %230 = vmatprep.subr.bf16.mxu1 %v1297_v7  ;;  %714 = vmatprep.subr.bf16.mxu0 %v1318_v18  ;;  %v1332_v32 = vld [vmem:[#allocation7 + $0x60] ss:$8 sps:$4 sm:$0xff]   ;;  %v1333_v33 = vld [vmem:[#allocation7 + $0x74] ss:$8 sps:$4 sm:$0xff]   ;;  %v1335_v34 = vld [vmem:[#allocation7 + $0x70] ss:$8 sps:$4 sm:$0xff]  }
  0x67   :  { %v1336_v35 = vld [vmem:[#allocation7 + $0x84] ss:$8 sps:$4 sm:$0xff]   ;;  %v1338_v36 = vld [vmem:[#allocation7 + $0x80] ss:$8 sps:$4 sm:$0xff]   ;;  %v1339_v37 = vld [vmem:[#allocation7 + $0x94] ss:$8 sps:$4 sm:$0xff]  }
  0x68   :  { %v1341_v38 = vld [vmem:[#allocation7 + $0x90] ss:$8 sps:$4 sm:$0xff]   ;;  %v1342_v39 = vld [vmem:[#allocation7 + $0xa4] ss:$8 sps:$4 sm:$0xff]   ;;  %v1344_v40 = vld [vmem:[#allocation7 + $0xa0] ss:$8 sps:$4 sm:$0xff]  }
  0x69   :  { %231 = vmatpush1.bf16.msra.mxu1 %v1299_v8  ;;  %715 = vmatpush1.bf16.msra.mxu0 %v1320_v20  ;;  %v1345_v41 = vld [vmem:[#allocation7 + $0xb4] ss:$8 sps:$4 sm:$0xff]   ;;  %v1347_v42 = vld [vmem:[#allocation7 + $0xb0] ss:$8 sps:$4 sm:$0xff]   ;;  %v1348_v43 = vld [vmem:[#allocation7 + $0xc4] ss:$8 sps:$4 sm:$0xff]  }
  0x6a   :  { %265 = vmatprep.subr.bf16.mxu1 %v1302_v10  ;;  %716 = vmatprep.subr.bf16.mxu0 %v1321_v21  ;;  %v1350_v44 = vld [vmem:[#allocation7 + $0xc0] ss:$8 sps:$4 sm:$0xff]   ;;  %v1351_v45 = vld [vmem:[#allocation7 + $0xd4] ss:$8 sps:$4 sm:$0xff]   ;;  %v1353_v46 = vld [vmem:[#allocation7 + $0xd0] ss:$8 sps:$4 sm:$0xff]  }
  0x6b   :  { %v1354_v47 = vld [vmem:[#allocation7 + $0xe4] ss:$8 sps:$4 sm:$0xff]   ;;  %v1356_v48 = vld [vmem:[#allocation7 + $0xe0] ss:$8 sps:$4 sm:$0xff]   ;;  %v1357_v49 = vld [vmem:[#allocation7 + $0xf4] ss:$8 sps:$4 sm:$0xff]  }
  0x6c   :  { %1124 = vmatmul.mubr.msk.bf16.vlgmr.msra.gmra.mrb[0].mxu1 %vm220_vm0, %v101_v14  ;;  %v1359_v50 = vld [vmem:[#allocation7 + $0xf0] ss:$8 sps:$4 sm:$0xff]   ;;  %v1362_v51 = vld [vmem:[#allocation7 + $0x104] ss:$8 sps:$4 sm:$0xff]   ;;  %v1360_v16 = vld [vmem:[#allocation7 + $0x100] ss:$8 sps:$4 sm:$0xff]  }
  0x6d   :  { %266 = vmatpush1.bf16.msra.mxu1 %v1300_v15  ;;  %297 = vmatprep.mubr.bf16.mxu1 %v1585_v0  ;;  %v1409_v53 = vld [vmem:[#allocation8] sm:$0xff]   ;;  %v1411_v55 = vld [vmem:[#allocation8 + $0x8] sm:$0xff]   ;;  %v1412_v56 = vld [vmem:[#allocation8 + $0x50] sm:$0xff]   ;;  %v120_v0 = vlaneseq }
  0x6e   :  { %267 = vmatprep.subr.bf16.mxu1 %v1305_v17  ;;  %717 = vmatpush1.bf16.msra.mxu0 %v1323_v24  ;;  %v1413_v57 = vld [vmem:[#allocation8 + $0x10] sm:$0xff]   ;;  %v1414_v58 = vld [vmem:[#allocation8 + $0x58] sm:$0xff]   ;;  %v1416_v60 = vld [vmem:[#allocation8 + $0x60] sm:$0xff]  }
  0x6f   :  { %718 = vmatprep.subr.bf16.mxu0 %v1324_v25  ;;  %v1415_v59 = vld [vmem:[#allocation8 + $0x18] sm:$0xff]   ;;  %v1417_v61 = vld [vmem:[#allocation8 + $0x20] sm:$0xff]   ;;  %v1418_v62 = vld [vmem:[#allocation8 + $0x68] sm:$0xff]   ;;  %v1714_v1 = vshrl.u32 %v120_v0, 7 }
  0x70   :  { %v1419_v63 = vld [vmem:[#allocation8 + $0x28] sm:$0xff]   ;;  %v1720_v3 = vld [vmem:[%s1760_s2] sm:$0xf]  ;;  %v1365_v18 = vld [vmem:[#allocation7 + $0x114] ss:$8 sps:$4 sm:$0xff]  }
  0x71   :  { %268 = vmatpush1.bf16.msra.mxu1 %v1303_v19  ;;  %v122_v2 = vsub.s32 0, %v1714_v1  ;;  %v126_v4 = vsub.s32 1, %v1714_v1  ;;  %v1363_v19 = vld [vmem:[#allocation7 + $0x110] ss:$8 sps:$4 sm:$0xff]   ;;  %v134_v20 = vsub.s32 3, %v1714_v1 }
  0x72   :  { %269 = vmatprep.subr.bf16.mxu1 %v1308_v22  ;;  %719 = vmatpush1.bf16.msra.mxu0 %v1326_v28  ;;  %v1368_v21 = vld [vmem:[#allocation7 + $0x124] ss:$8 sps:$4 sm:$0xff]   ;;  %v1366_v22 = vld [vmem:[#allocation7 + $0x120] ss:$8 sps:$4 sm:$0xff]   ;;  %v1371_v24 = vld [vmem:[#allocation7 + $0x134] ss:$8 sps:$4 sm:$0xff]  }
  0x73   :  { %720 = vmatprep.subr.bf16.mxu0 %v1327_v29  ;;  %v123_v5 = vrot.slane %v1720_v3, %v122_v2  ;;  %v127_v6 = vrot.slane %v1720_v3, %v126_v4  ;;  %v1422_v0 = vld [vmem:[#allocation8 + $0x78] sm:$0xff]  }
  0x75   :  { %270 = vmatpush1.bf16.msra.mxu1 %v1306_v23  ;;  %v135_v23 = vrot.slane %v1720_v3, %v134_v20  ;;  %v1425_v20 = vld [vmem:[#allocation10 + $0x8] sm:$0xff]  }
  0x76   :  { %271 = vmatprep.subr.bf16.mxu1 %v1311_v26  ;;  %721 = vmatpush1.bf16.msra.mxu0 %v1329_v30  ;;  %v1374_v30 = vld [vmem:[#allocation7 + $0x144] ss:$8 sps:$4 sm:$0xff]  }
  0x77   :  { %722 = vmatprep.subr.bf16.mxu0 %v1330_v31 }
  0x79   :  { %272 = vmatpush1.bf16.msra.mxu1 %v1309_v27  ;;  %v1369_v27 = vld [vmem:[#allocation7 + $0x130] ss:$8 sps:$4 sm:$0xff]  }
  0x7a   :  { %723 = vmatpush1.bf16.msra.mxu0 %v1332_v32  ;;  %1216 = vmatprep.subr.bf16.mxu1 %v1408_v52  ;;  %v1401_v52 = vld [vmem:[#allocation7 + $0x1d4] ss:$8 sps:$4 sm:$0xff]  }
  0x7b   :  { %724 = vmatprep.subr.bf16.mxu0 %v1333_v33  ;;  %v1372_v33 = vld [vmem:[#allocation7 + $0x140] ss:$8 sps:$4 sm:$0xff]  }
  0x7c   :  { %1125 = vmatmul.mubr.msk.bf16.vlgmr.msra.gmra.mrb[4].mxu1 %vm220_vm0, %v101_v14 }
  0x7d   :  { %1217 = vmatpush3.bf16.msra.mxu1 %v1409_v53  ;;  %v1399_v53 = vld [vmem:[#allocation7 + $0x1d0] ss:$8 sps:$4 sm:$0xff]  }
  0x7e   :  { %725 = vmatpush1.bf16.msra.mxu0 %v1335_v34  ;;  %1218 = vmatprep.subr.bf16.mxu1 %v1410_v54 }
  0x7f   :  { %726 = vmatprep.subr.bf16.mxu0 %v1336_v35  ;;  %v1377_v35 = vld [vmem:[#allocation7 + $0x154] ss:$8 sps:$4 sm:$0xff]  }
  0x81   :  { %1219 = vmatpush3.bf16.msra.mxu1 %v1411_v55  ;;  %v1404_v55 = vld [vmem:[#allocation7 + $0x1e4] ss:$8 sps:$4 sm:$0xff]  }
  0x82   :  { %727 = vmatpush1.bf16.msra.mxu0 %v1338_v36  ;;  %1220 = vmatprep.subr.bf16.mxu1 %v1412_v56  ;;  %v1375_v36 = vld [vmem:[#allocation7 + $0x150] ss:$8 sps:$4 sm:$0xff]   ;;  %v1402_v56 = vld [vmem:[#allocation7 + $0x1e0] ss:$8 sps:$4 sm:$0xff]  }
  0x83   :  { %728 = vmatprep.subr.bf16.mxu0 %v1339_v37  ;;  %v1380_v37 = vld [vmem:[#allocation7 + $0x164] ss:$8 sps:$4 sm:$0xff]  }
  0x85   :  { %1221 = vmatpush3.bf16.msra.mxu1 %v1413_v57 }
  0x86   :  { %729 = vmatpush1.bf16.msra.mxu0 %v1341_v38  ;;  %1222 = vmatprep.subr.bf16.mxu1 %v1414_v58  ;;  %v1378_v38 = vld [vmem:[#allocation7 + $0x160] ss:$8 sps:$4 sm:$0xff]   ;;  %v1407_v58 = vld [vmem:[#allocation7 + $0x1f4] ss:$8 sps:$4 sm:$0xff]  }
  0x87   :  { %730 = vmatprep.subr.bf16.mxu0 %v1342_v39  ;;  %v1383_v39 = vld [vmem:[#allocation7 + $0x174] ss:$8 sps:$4 sm:$0xff]  }
  0x89   :  { %1223 = vmatpush3.bf16.msra.mxu1 %v1415_v59  ;;  %v1405_v59 = vld [vmem:[#allocation7 + $0x1f0] ss:$8 sps:$4 sm:$0xff]  }
  0x8a   :  { %731 = vmatpush1.bf16.msra.mxu0 %v1344_v40  ;;  %1224 = vmatprep.subr.bf16.mxu1 %v1416_v60  ;;  %v1381_v40 = vld [vmem:[#allocation7 + $0x170] ss:$8 sps:$4 sm:$0xff]  }
  0x8b   :  { %732 = vmatprep.subr.bf16.mxu0 %v1345_v41  ;;  %v1386_v41 = vld [vmem:[#allocation7 + $0x184] ss:$8 sps:$4 sm:$0xff]  }
  0x8d   :  { %1225 = vmatpush3.bf16.msra.mxu1 %v1417_v61 }
  0x8e   :  { %733 = vmatpush1.bf16.msra.mxu0 %v1347_v42  ;;  %1226 = vmatprep.subr.bf16.mxu1 %v1418_v62  ;;  %v1384_v42 = vld [vmem:[#allocation7 + $0x180] ss:$8 sps:$4 sm:$0xff]   ;;  %v1420_v62 = vld [vmem:[#allocation8 + $0x70] sm:$0xff]  }
  0x8f   :  { %734 = vmatprep.subr.bf16.mxu0 %v1348_v43  ;;  %v1389_v43 = vld [vmem:[#allocation7 + $0x194] ss:$8 sps:$4 sm:$0xff]  }
  0x91   :  { %1227 = vmatpush3.bf16.msra.mxu1 %v1419_v63  ;;  %v1421_v63 = vld [vmem:[#allocation8 + $0x30] sm:$0xff]  }
  0x92   :  { %735 = vmatpush1.bf16.msra.mxu0 %v1350_v44  ;;  %v1387_v44 = vld [vmem:[#allocation7 + $0x190] ss:$8 sps:$4 sm:$0xff]   ;;  %1228 = vmatprep.subr.bf16.mxu1 %v1420_v62 }
  0x93   :  { %736 = vmatprep.subr.bf16.mxu0 %v1351_v45  ;;  %v1392_v45 = vld [vmem:[#allocation7 + $0x1a4] ss:$8 sps:$4 sm:$0xff]  }
  0x95   :  { %1229 = vmatpush3.bf16.msra.mxu1 %v1421_v63 }
  0x96   :  { %737 = vmatpush1.bf16.msra.mxu0 %v1353_v46  ;;  %v1390_v46 = vld [vmem:[#allocation7 + $0x1a0] ss:$8 sps:$4 sm:$0xff]   ;;  %1230 = vmatprep.subr.bf16.mxu1 %v1422_v0 }
  0x97   :  { %738 = vmatprep.subr.bf16.mxu0 %v1354_v47  ;;  %v1395_v47 = vld [vmem:[#allocation7 + $0x1b4] ss:$8 sps:$4 sm:$0xff]  }
  0x9a   :  { %739 = vmatpush1.bf16.msra.mxu0 %v1356_v48  ;;  %v1393_v48 = vld [vmem:[#allocation7 + $0x1b0] ss:$8 sps:$4 sm:$0xff]  }
  0x9b   :  { %740 = vmatprep.subr.bf16.mxu0 %v1357_v49  ;;  %v1398_v49 = vld [vmem:[#allocation7 + $0x1c4] ss:$8 sps:$4 sm:$0xff]  }
  0x9e   :  { %741 = vmatpush1.bf16.msra.mxu0 %v1359_v50  ;;  %v1396_v50 = vld [vmem:[#allocation7 + $0x1c0] ss:$8 sps:$4 sm:$0xff]  }
  0x9f   :  { %751 = vmatprep.subr.bf16.mxu0 %v1362_v51  ;;  %v130_v51 = vsub.s32 2, %v1714_v1  ;;  %v1427_v1 = vld [vmem:[#allocation10 + $0x18] sm:$0xff]  }
  0xa1   :  { %v131_v54 = vrot.slane %v1720_v3, %v130_v51  ;;  %v1423_v3 = vld [vmem:[#allocation8 + $0x38] sm:$0xff]  }
  0xa2   :  { %1231 = vmatpush3.bf16.msra.mxu1 %v1423_v3 }
 0x13f   :  { %v258_v7 = vpop.f32.mrb[0].mxu1 }
 0x140   :  { %v259_v8 = vadd.f32 %v258_v7, %v123_v5  ;;  %v260_v9 = vpop.f32.mrb[1].mxu1  ;;  %v1586_v5 = vmov 0.0  }
 0x141   :  { %v261_v10 = vadd.f32 %v260_v9, %v127_v6  ;;  %v262_v11 = vpop.f32.mrb[2].mxu1  ;;  %1247 = vmatprep.subr.bf16.mxu1 %v1586_v5  ;;  %v378_v6 = vld [vmem:[%s1762_s4] sm:$0x3] }
 0x142   :  { %v306_v12 = vmax.f32 %v259_v8, 0.0  ;;  %v263_v13 = vpop.f32.mrb[3].mxu1  ;;  %v383_v7 = vrot.slane %v378_v6, %v122_v2  ;;  %v387_v8 = vrot.slane %v378_v6, %v126_v4  ;;  %v1426_v2 = vld [vmem:[#allocation10 + $0x10] sm:$0xff]   ;;  %v1428_v4 = vld [vmem:[#allocation10 + $0x20] sm:$0xff]  }
 0x143   :  { %v307_v14 = vmax.f32 %v261_v10, 0.0 }
 0x144   :  { %v310_v17 = vpack.c.bf16 %v306_v12, %v306_v12 }
 0x145   :  { %v311_v15 = vpack.c.bf16 %v307_v14, %v307_v14 }
 0x147   :  { %742 = vmatprep.mubr.bf16.mxu0 %v311_v15 }
 0x148   :  { %743 = vmatmul.mubr.bf16.vlgmr.msra.gmra.mrb[0].mxu0 %v310_v17 }
 0x149   :  { %752 = vmatpush1.bf16.msra.mxu0 %v1360_v16 }
 0x14a   :  { %753 = vmatprep.subr.bf16.mxu0 %v1365_v18  ;;  %v1424_v18 = vld [vmem:[#allocation10] sm:$0xff]  }
 0x14d   :  { %754 = vmatpush1.bf16.msra.mxu0 %v1363_v19 }
 0x14e   :  { %755 = vmatprep.subr.bf16.mxu0 %v1368_v21  ;;  %v1429_v21 = vld [vmem:[#allocation10 + $0x28] sm:$0xff]  }
 0x14f   :  { %v299_v25 = vpop.f32.mrb[4].mxu1 }
 0x150   :  { %v301_v26 = vpop.f32.mrb[5].mxu1  ;;  %v300_v57 = vadd.f32 %v299_v25, %v131_v54  ;;  %v1190_v25 = vld [vmem:[%s1764_s6] ss:$0 sm:$0xff]  ;;  %s1588_s6 = smov [#allocation11]  }
 0x151   :  { %756 = vmatpush1.bf16.msra.mxu0 %v1366_v22  ;;  %v302_v28 = vadd.f32 %v301_v26, %v135_v23  ;;  %v303_v29 = vpop.f32.mrb[6].mxu1  ;;  %v1430_v22 = vld [vmem:[#allocation10 + $0x30] sm:$0xff]   ;;  %v1431_v23 = vld [vmem:[#allocation10 + $0x38] sm:$0xff]   ;;  %s1097_s12 = sshll.u32 %s1588_s6, 4  ;;  %s1098_s12 = int_to_ptr.vmem [resolvable:$true] %s1097_s12 }
 0x152   :  { %757 = vmatprep.subr.bf16.mxu0 %v1371_v24  ;;  %v304_v31 = vpop.f32.mrb[7].mxu1  ;;  %v308_v60 = vmax.f32 %v300_v57, 0.0  ;;  %s1544_s13 = scalar_lea.vmem %s1098_s12, 128  ;;  %p1549_p13 = scmp.lt.s32.totalorder %s1098_s12, %s1098_s12 }
 0x153   :  { %v309_v32 = vmax.f32 %v302_v28, 0.0  ;;  %p1545_p12 = scmp.ne.s32.totalorder %s1098_s12, %s1544_s13  ;;  %p1550_p0 = scmp.lt.s32.totalorder %s1544_s13, %s1544_s13 }
 0x154   :  { %v312_v61 = vpack.c.bf16 %v308_v60, %v308_v60 }
 0x155   :  { %758 = vmatpush1.bf16.msra.mxu0 %v1369_v27  ;;  %v313_v34 = vpack.c.bf16 %v309_v32, %v309_v32  ;;  %p1551_p1 = por %p1550_p0, %p1549_p13 }
 0x156   :  { %759 = vmatprep.subr.bf16.mxu0 %v1374_v30 }
 0x157   :  { %783 = vmatprep.mubr.bf16.mxu0 %v313_v34  ;;  %p1552_p2 = pnand %p1551_p1, %p1545_p12 }
 0x159   :  { %760 = vmatpush1.bf16.msra.mxu0 %v1372_v33  ;;  %v1207_v33 = vld [vmem:[%s1766_s8] ss:$0 sm:$0xff] }
 0x15a   :  { %761 = vmatprep.subr.bf16.mxu0 %v1377_v35 }
 0x15d   :  { %762 = vmatpush1.bf16.msra.mxu0 %v1375_v36 }
 0x15e   :  { %763 = vmatprep.subr.bf16.mxu0 %v1380_v37 }
 0x161   :  { %764 = vmatpush1.bf16.msra.mxu0 %v1378_v38 }
 0x162   :  { %765 = vmatprep.subr.bf16.mxu0 %v1383_v39 }
 0x165   :  { %766 = vmatpush1.bf16.msra.mxu0 %v1381_v40 }
 0x166   :  { %767 = vmatprep.subr.bf16.mxu0 %v1386_v41 }
 0x169   :  { %768 = vmatpush1.bf16.msra.mxu0 %v1384_v42 }
 0x16a   :  { %769 = vmatprep.subr.bf16.mxu0 %v1389_v43 }
 0x16d   :  { %770 = vmatpush1.bf16.msra.mxu0 %v1387_v44 }
 0x16e   :  { %771 = vmatprep.subr.bf16.mxu0 %v1392_v45 }
 0x171   :  { %772 = vmatpush1.bf16.msra.mxu0 %v1390_v46 }
 0x172   :  { %773 = vmatprep.subr.bf16.mxu0 %v1395_v47 }
 0x175   :  { %774 = vmatpush1.bf16.msra.mxu0 %v1393_v48 }
 0x176   :  { %775 = vmatprep.subr.bf16.mxu0 %v1398_v49 }
 0x179   :  { %776 = vmatpush1.bf16.msra.mxu0 %v1396_v50 }
 0x17a   :  { %777 = vmatprep.subr.bf16.mxu0 %v1401_v52 }
 0x17d   :  { %778 = vmatpush1.bf16.msra.mxu0 %v1399_v53 }
 0x17e   :  { %779 = vmatprep.subr.bf16.mxu0 %v1404_v55 }
 0x181   :  { %780 = vmatpush1.bf16.msra.mxu0 %v1402_v56 }
 0x182   :  { %781 = vmatprep.subr.bf16.mxu0 %v1407_v58 }
 0x185   :  { %782 = vmatpush1.bf16.msra.mxu0 %v1405_v59 }
 0x188   :  { %784 = vmatmul.mubr.bf16.vlgmr.msra.gmra.mrb[0].mxu0 %v312_v61 }
 0x25b   :  { %v785_v9 = vpop.f32.mrb[0].mxu0 }
 0x25c   :  { %v1267_v10 = vadd.f32 %v785_v9, %v383_v7  ;;  %v787_v11 = vpop.f32.mrb[1].mxu0 }
 0x25d   :  { %v1268_v12 = vadd.f32 %v787_v11, %v387_v8  ;;  %v789_v13 = vpop.f32.mrb[2].mxu0 }
 0x25e   :  { %v792_v14 = vmax.f32 %v1267_v10, 0.0  ;;  %v790_v15 = vpop.f32.mrb[3].mxu0 }
 0x25f   :  { %v793_v16 = vmax.f32 %v1268_v12, 0.0 }
 0x260   :  { %v794_v19 = vpack.c.bf16 %v792_v14, %v792_v14 }
 0x261   :  { %v795_v17 = vpack.c.bf16 %v793_v16, %v793_v16 }
 0x263   :  { %963 = vmatprep.mubr.bf16.mxu1 %v795_v17 }
 0x264   :  { %964 = vmatmul.mubr.bf16.vlgmr.msra.gmra.mrb[8].mxu1 %v794_v19 }
 0x265   :  { %1248 = vmatpush3.bf16.msra.mxu1 %v1424_v18  ;;  %1263 = vmatprep.mubr.msk.bf16.mxu1 %vm1587_vm1, %v1586_v5 }
 0x266   :  { %1249 = vmatprep.subr.bf16.mxu1 %v1586_v5 }
 0x269   :  { %1250 = vmatpush3.bf16.msra.mxu1 %v1425_v20 }
 0x26a   :  { %1251 = vmatprep.subr.bf16.mxu1 %v1586_v5 }
 0x26d   :  { %1252 = vmatpush3.bf16.msra.mxu1 %v1426_v2 }
 0x26e   :  { %1253 = vmatprep.subr.bf16.mxu1 %v1586_v5 }
 0x271   :  { %1254 = vmatpush3.bf16.msra.mxu1 %v1427_v1 }
 0x272   :  { %1255 = vmatprep.subr.bf16.mxu1 %v1586_v5 }
 0x275   :  { %1256 = vmatpush3.bf16.msra.mxu1 %v1428_v4 }
 0x276   :  { %1257 = vmatprep.subr.bf16.mxu1 %v1586_v5 }
 0x279   :  { %1258 = vmatpush3.bf16.msra.mxu1 %v1429_v21 }
 0x27a   :  { %1259 = vmatprep.subr.bf16.mxu1 %v1586_v5 }
 0x27d   :  { %1260 = vmatpush3.bf16.msra.mxu1 %v1430_v22 }
 0x27e   :  { %1261 = vmatprep.subr.bf16.mxu1 %v1586_v5 }
 0x281   :  { %1262 = vmatpush3.bf16.msra.mxu1 %v1431_v23 }
 0x337   :  { %v1232_v24 = vpop.f32.mrb[8].mxu1 }
 0x338   :  { %v1233_v26 = vpop.f32.mrb[9].mxu1 }
 0x339   :  { %v1234_v27 = vadd.f32 %v1233_v26, %v1232_v24  ;;  %v1235_v28 = vpop.f32.mrb[10].mxu1 }
 0x33a   :  { %v1236_v29 = vpop.f32.mrb[11].mxu1 }
 0x33b   :  { %v966_v30 = vadd.f32 %v1234_v27, %v1190_v25 }
 0x33d   :  { %v971_v31 = vmax.f32 %v966_v30, 0.0 }
 0x33f   :  { %v972_v32 = vpack.c.bf16 %v971_v31, %v971_v31 }
 0x341   :  { %1264 = vmatmul.mubr.bf16.vlgmr.msra.gmra.mrb[12].mxu1 %v972_v32 }
 0x414   :  { %v1078_v34 = vpop.f32.mrb[12].mxu1 }
 0x415   :  { %v1079_v35 = vadd.f32 %v1207_v33, %v1078_v34  ;;  %v1265_v36 = vpop.f32.mrb[13].mxu1 }
 0x416   :  { %v1081_v37 = vpop.f32.mrb[14].mxu1 }
 0x417   :  { %v1266_v38 = vpop.f32.mrb[15].mxu1  ;;  %v1084_v39 = vmul.f32 %v1079_v35, %v1079_v35 }
 0x419   :  { %1085 = vadd.xlane.f32.xlu0 %v1084_v39 }
 0x4a6   :  { %v1086_v40 = vpop.xlane.xlu0 %1085 }
 0x4a7   :  { %v1087_v41 = vmax.f32 %v1086_v40, 1e-24 }
 0x4a9   :  { %1432 = vrsqrt.f32 %v1087_v41 }
 0x4b3   :  { %v1433_v42 = vpop.eup %1432 }
 0x4b4   :  { %v1089_v43 = vmul.f32 %v1433_v42, %v1079_v35 }
 0x4b6   :  { %1090 = vst [vmem:[#allocation11] sm:$0xff] %v1089_v43 }
 0x4b7   :  { %1555 = shalt.err (!%p1552_p2)
}
 0x4b8   :  { %s1556_s15 = scalar_lea.hbm %s1767_s9, 128 }
 0x4b9   :  { %p1557_p3 = scmp.ne.s32.totalorder %s1767_s9, %s1556_s15  ;;  %p1560_p4 = scmp.lt.u32.totalorder %s1556_s15, %s1767_s9 }
 0x4bb   :  { %p1562_p5 = pnand %p1560_p4, %p1557_p3 }
 0x4bd   :  { %1565 = shalt.err (!%p1562_p5)
}
 0x4be   :  { %1100 = dma.vmem_to_hbm [thread:$0]  %s1098_s12, 128, %s1767_s9, [#allocation4]  }
 0x4bf   :  { %1572 = dma.done.wait [#allocation4], 128  }
 0x4c0   :  { %1573 = vsyncadd [#allocation4], 4294967168 }
 0x4c1   :  { %1104 = vsyncpa [#allocation3], 1 }
 0x4c2   :  { %1105 = vsyncpa [#allocation6], 1 }
 0x4c3   :  { %1106 = vsyncpa [#allocation9], 1 }
 0x4c4   :  { %1107 = vsyncpa [#allocation4], 1 }

</bundles_post_ra>
